<compile_context>
chip_gen: v6e
topology: v6e:2x2x1
jax: 0.10.0
libtpu: 0.0.40
codegen_flags: <defaults>
</compile_context>

<pallas_src>
import functools

import jax
import jax.numpy as jnp
from jax import lax
from jax.experimental import pallas as pl
from jax.experimental.pallas import tpu as pltpu


# ---------------------------------------------------------------------------
# Stage 1: h = GELU(x @ w1 + b1)   (single grid step, w1 loaded exactly once)
# ---------------------------------------------------------------------------
def proj_in_kernel(x_ref, w1_ref, b1_ref, h_ref):
    h = jnp.dot(x_ref[...].astype(w1_ref.dtype), w1_ref[...],
                preferred_element_type=jnp.float32)
    h = h + b1_ref[...].astype(jnp.float32)
    # Exact GELU (torch.nn.GELU default): 0.5*x*(1+erf(x/sqrt(2)))
    h = 0.5 * h * (1.0 + lax.erf(h * 0.7071067811865476))
    # TODO(synk): Dropout(0.1) is identity at inference; training-mode dropout
    # is not implemented.
    h_ref[...] = h.astype(h_ref.dtype)


# ---------------------------------------------------------------------------
# Stage 2: y tile = h @ w2[:, tile] + b2[tile]; fused LayerNorm epilogue
# ---------------------------------------------------------------------------
def clip_proj_tile_kernel(h_ref, w2_ref, b2_ref, g_ref, beta_ref, o_ref, *,
                          tokens_per_tile, cross_dim, tn):
    j = pl.program_id(0)

    # ---- Linear(hidden -> TN) on the streamed w2 column tile ----------------
    y = jnp.dot(h_ref[...], w2_ref[...], preferred_element_type=jnp.float32)
    col0 = pl.multiple_of(j * tn, tn)                 # tn is a multiple of 128
    y = y + b2_ref[:, pl.ds(col0, tn)].astype(jnp.float32)

    # ---- Fused LayerNorm(cross_dim) epilogue --------------------------------
    # TN is a multiple of cross_dim, so lane slice [t*cd, (t+1)*cd) is exactly
    # one token.  Broadcasts hoisted out of the (static, unrolled) token loop;
    # one-pass mean / mean-of-squares keeps a single reduction chain per token.
    bsz = y.shape[0]
    g = jnp.broadcast_to(g_ref[...].astype(jnp.float32), (bsz, cross_dim))
    b = jnp.broadcast_to(beta_ref[...].astype(jnp.float32), (bsz, cross_dim))
    inv_cd = 1.0 / cross_dim
    for t in range(tokens_per_tile):
        lo = t * cross_dim
        yt = y[:, lo:lo + cross_dim]
        mu = jnp.sum(yt, axis=-1, keepdims=True) * inv_cd
        ms = jnp.sum(yt * yt, axis=-1, keepdims=True) * inv_cd
        var = ms - mu * mu
        out = (yt - mu) * lax.rsqrt(var + 1e-5) * g + b
        o_ref[:, lo:lo + cross_dim] = out.astype(o_ref.dtype)


# ---------------------------------------------------------------------------
# Helpers
# ---------------------------------------------------------------------------
def _spec(block_shape, index_map, buffers=None):
    """BlockSpec; optionally single-buffered for grid-invariant inputs."""
    if buffers is None:
        return pl.BlockSpec(block_shape, index_map)
    try:
        return pl.BlockSpec(block_shape, index_map,
                            pipeline_mode=pl.Buffered(buffers))
    except TypeError:  # older pallas without pipeline_mode kwarg
        return pl.BlockSpec(block_shape, index_map)


def _pick_tokens_per_tile(num_tokens, cross_dim, tn_target):
    """Token-aligned tile width near tn_target lanes, preferring an even
    tile count >= 4 (>= 2 tiles per v7x TensorCore)."""
    max_tpt = max(1, tn_target // cross_dim)
    divisors = [d for d in range(1, num_tokens + 1) if num_tokens % d == 0]
    feasible = [d for d in divisors if d <= max_tpt] or [1]
    for pred in (lambda n: n % 2 == 0 and n >= 4,   # balanced + overlapped
                 lambda n: n % 2 == 0,              # at least balanced
                 lambda n: True):
        good = [d for d in feasible if pred(num_tokens // d)]
        if good:
            return max(good)
    return 1


# ---------------------------------------------------------------------------
# Wrapper
# ---------------------------------------------------------------------------
def clip_proj_forward(clip_embeds, params, *, num_tokens, cross_attention_dim,
                      tn_target=2048):
    """Fused Linear -> GELU -> Linear -> reshape -> LayerNorm forward pass."""
    B, clip_dim = clip_embeds.shape
    hidden = params["w1"].shape[1]
    out_dim = params["w2"].shape[1]
    cd = cross_attention_dim
    assert out_dim == num_tokens * cd

    w_dtype = params["w2"].dtype

    # ---- Stage 1: h = GELU(x @ w1 + b1), computed once ----------------------
    h = pl.pallas_call(
        proj_in_kernel,
        out_shape=jax.ShapeDtypeStruct((B, hidden), w_dtype),
        grid_spec=pltpu.PrefetchScalarGridSpec(
            num_scalar_prefetch=0,
            grid=(1,),
            in_specs=[
                pl.BlockSpec((B, clip_dim), lambda i: (0, 0)),
                pl.BlockSpec((clip_dim, hidden), lambda i: (0, 0)),
                pl.BlockSpec((1, hidden), lambda i: (0, 0)),
            ],
            out_specs=pl.BlockSpec((B, hidden), lambda i: (0, 0)),
        ),
        compiler_params=pltpu.CompilerParams(
            dimension_semantics=("arbitrary",)),
    )(clip_embeds, params["w1"], params["b1"])

    # ---- Tile selection for the streamed second GEMM ------------------------
    tokens_per_tile = _pick_tokens_per_tile(num_tokens, cd, tn_target)
    tn = tokens_per_tile * cd
    n_tiles = out_dim // tn

    # ---- Shape-derived VMEM cap (streamed double-buffers + residents) -------
    w2_isz = jnp.dtype(w_dtype).itemsize
    out_isz = jnp.dtype(clip_embeds.dtype).itemsize
    streamed = 2 * hidden * tn * w2_isz + 2 * B * tn * out_isz
    resident = (B * hidden * w2_isz
                + out_dim * jnp.dtype(params["b2"].dtype).itemsize
                + 2 * cd * 4)
    vmem_limit = int(1.5 * (streamed + resident)) + (8 << 20)
    vmem_limit = min(max(vmem_limit, 32 << 20), 64 << 20)  # <= v7x physical

    kernel = functools.partial(clip_proj_tile_kernel,
                               tokens_per_tile=tokens_per_tile,
                               cross_dim=cd, tn=tn)

    y = pl.pallas_call(
        kernel,
        out_shape=jax.ShapeDtypeStruct((B, out_dim), clip_embeds.dtype),
        grid_spec=pltpu.PrefetchScalarGridSpec(
            num_scalar_prefetch=0,
            grid=(n_tiles,),
            in_specs=[
                _spec((B, hidden), lambda j: (0, 0), buffers=1),    # h (resident)
                _spec((hidden, tn), lambda j: (0, j)),              # w2 (streamed, 2-buf)
                _spec((1, out_dim), lambda j: (0, 0), buffers=1),   # b2 (resident, sliced)
                _spec((1, cd), lambda j: (0, 0), buffers=1),        # LN gamma
                _spec((1, cd), lambda j: (0, 0), buffers=1),        # LN beta
            ],
            out_specs=pl.BlockSpec((B, tn), lambda j: (0, j)),
        ),
        compiler_params=pltpu.CompilerParams(
            # Independent output-column tiles -> shard across both v7x TCs.
            dimension_semantics=("parallel",),
            vmem_limit_bytes=vmem_limit,
        ),
    )(h, params["w2"], params["b2"], params["ln_g"], params["ln_b"])

    # Free, contiguous view: (B, num_tokens*cd) -> (B, num_tokens, cd).
    return y.reshape(B, num_tokens, cd)


# ---------------------------------------------------------------------------
# Pure-JAX reference (bf16 MXU inputs mimicked so the comparison is tight)
# ---------------------------------------------------------------------------
def reference_forward(clip_embeds, params, *, num_tokens, cross_attention_dim):
    def mxu(a, w):  # cast activations to the weight dtype, accumulate in f32
        return a.astype(w.dtype).astype(jnp.float32) @ w.astype(jnp.float32)

    h = mxu(clip_embeds, params["w1"]) + params["b1"]
    h = 0.5 * h * (1.0 + lax.erf(h * 0.7071067811865476))
    y = mxu(h, params["w2"]) + params["b2"]
    y = y.reshape(-1, num_tokens, cross_attention_dim)
    mu = jnp.mean(y, axis=-1, keepdims=True)
    var = jnp.mean((y - mu) ** 2, axis=-1, keepdims=True)
    return (y - mu) * lax.rsqrt(var + 1e-5) * params["ln_g"] + params["ln_b"]


def init_params(key, clip_dim, cross_dim, num_tokens,
                weight_dtype=jnp.bfloat16, dtype=jnp.float32):
    hidden = clip_dim * 2
    out_dim = cross_dim * num_tokens
    k1, k2, k3, k4 = jax.random.split(key, 4)
    # Deterministic small-scale init (synthetic weights, not a checkpoint).
    # Matmul weights are stored in bf16 (weight streaming is the bottleneck);
    # biases and LayerNorm params stay f32.
    w1 = (jax.random.normal(k1, (clip_dim, hidden), dtype) * 0.02).astype(weight_dtype)
    b1 = jax.random.normal(k2, (1, hidden), dtype) * 0.01
    w2 = (jax.random.normal(k3, (hidden, out_dim), dtype) * 0.02).astype(weight_dtype)
    b2 = jax.random.normal(k4, (1, out_dim), dtype) * 0.01
    ln_g = jnp.ones((1, cross_dim), dtype)
    ln_b = jnp.zeros((1, cross_dim), dtype)
    return {"w1": w1, "b1": b1, "w2": w2, "b2": b2, "ln_g": ln_g, "ln_b": ln_b}


if __name__ == "__main__":
    # Small shapes consistent with the module (scaled-down 768 -> 128).
    B = 2
    clip_embeddings_dim = 128
    cross_attention_dim = 128
    num_tokens = 8

    key = jax.random.PRNGKey(0)
    k_x, k_p = jax.random.split(key)
    clip_embeds = jax.random.normal(k_x, (B, clip_embeddings_dim), jnp.float32)
    params = init_params(k_p, clip_embeddings_dim, cross_attention_dim, num_tokens)

    # Small tn_target so the demo exercises a multi-tile (even, >=4) grid.
    out = clip_proj_forward(clip_embeds, params,
                            num_tokens=num_tokens,
                            cross_attention_dim=cross_attention_dim,
                            tn_target=256)
    out = jax.block_until_ready(out)
    assert out.shape == (B, num_tokens, cross_attention_dim), out.shape

    ref = reference_forward(clip_embeds, params,
                            num_tokens=num_tokens,
                            cross_attention_dim=cross_attention_dim)
    assert jnp.allclose(out, ref, atol=1e-2, rtol=1e-2), \
        float(jnp.max(jnp.abs(out - ref)))
    print("KERNEL_OK")
</pallas_src>

<mosaic_0001>
module attributes {stable_mosaic.version = 11 : i64} {
  func.func @proj_in_kernel(%arg0: i32, %arg1: memref<2x128xf32, #tpu.memory_space<vmem>>, %arg2: memref<128x256xbf16, #tpu.memory_space<vmem>>, %arg3: memref<1x256xf32, #tpu.memory_space<vmem>>, %arg4: memref<2x256xbf16, #tpu.memory_space<vmem>>) attributes {dimension_semantics = [#tpu.dimension_semantics<arbitrary>], iteration_bounds = array<i64: 1>, scalar_prefetch = 0 : i64, scratch_operands = 0 : i64, tpu.core_type = #tpu.core_type<tc>, window_params = [{pipeline_mode = #tpu.pipeline_mode<synchronous>, transform_indices = @transform_0, window_bounds = array<i64: 2, 128>}, {pipeline_mode = #tpu.pipeline_mode<synchronous>, transform_indices = @transform_1, window_bounds = array<i64: 128, 256>}, {pipeline_mode = #tpu.pipeline_mode<synchronous>, transform_indices = @transform_2, window_bounds = array<i64: 1, 256>}, {pipeline_mode = #tpu.pipeline_mode<synchronous>, transform_indices = @transform_3, window_bounds = array<i64: 2, 256>}]} {
    %c0 = arith.constant 0 : index
    %c0_0 = arith.constant 0 : index
    %0 = vector.load %arg1[%c0, %c0_0] : memref<2x128xf32, #tpu.memory_space<vmem>>, vector<2x128xf32>
    %1 = arith.truncf %0 : vector<2x128xf32> to vector<2x128xbf16>
    %c0_1 = arith.constant 0 : index
    %c0_2 = arith.constant 0 : index
    %2 = vector.load %arg2[%c0_1, %c0_2] : memref<128x256xbf16, #tpu.memory_space<vmem>>, vector<128x256xbf16>
    %cst = arith.constant dense<0.000000e+00> : vector<2x256xf32>
    %3 = tpu.matmul %1, %2, %cst {dimension_numbers = #tpu.dot_dimension_numbers<[1], [0], [0], [1], [0, 0, 1, 1], [], []>} : vector<2x128xbf16>, vector<128x256xbf16>, vector<2x256xf32> -> vector<2x256xf32>
    %c0_3 = arith.constant 0 : index
    %c0_4 = arith.constant 0 : index
    %4 = vector.load %arg3[%c0_3, %c0_4] : memref<1x256xf32, #tpu.memory_space<vmem>>, vector<1x256xf32>
    %5 = vector.broadcast %4 : vector<1x256xf32> to vector<2x256xf32>
    %6 = arith.addf %3, %5 : vector<2x256xf32>
    %cst_5 = arith.constant 5.000000e-01 : f32
    %7 = vector.broadcast %cst_5 : f32 to vector<2x256xf32>
    %8 = arith.mulf %7, %6 : vector<2x256xf32>
    %cst_6 = arith.constant 0.707106769 : f32
    %9 = vector.broadcast %cst_6 : f32 to vector<2x256xf32>
    %10 = arith.mulf %6, %9 : vector<2x256xf32>
    %11 = math.erf %10 : vector<2x256xf32>
    %cst_7 = arith.constant 1.000000e+00 : f32
    %12 = vector.broadcast %cst_7 : f32 to vector<2x256xf32>
    %13 = arith.addf %12, %11 : vector<2x256xf32>
    %14 = arith.mulf %8, %13 : vector<2x256xf32>
    %15 = arith.truncf %14 : vector<2x256xf32> to vector<2x256xbf16>
    %c0_8 = arith.constant 0 : index
    %c0_9 = arith.constant 0 : index
    %16 = vector.load %arg4[%c0_8, %c0_9] : memref<2x256xbf16, #tpu.memory_space<vmem>>, vector<2x256xbf16>
    tpu.vector_store %arg4[%c0_8, %c0_9], %15 {strides = array<i32>} : memref<2x256xbf16, #tpu.memory_space<vmem>>, vector<2x256xbf16>,
    return
  }
  func.func @transform_0(%arg0: i32) -> (i32, i32) {
    %c0_i32 = arith.constant 0 : i32
    %c0_i32_0 = arith.constant 0 : i32
    %c0_i32_1 = arith.constant 0 : i32
    return %c0_i32, %c0_i32_0 : i32, i32
  }
  func.func @transform_1(%arg0: i32) -> (i32, i32) {
    %c0_i32 = arith.constant 0 : i32
    %c0_i32_0 = arith.constant 0 : i32
    %c0_i32_1 = arith.constant 0 : i32
    return %c0_i32, %c0_i32_0 : i32, i32
  }
  func.func @transform_2(%arg0: i32) -> (i32, i32) {
    %c0_i32 = arith.constant 0 : i32
    %c0_i32_0 = arith.constant 0 : i32
    %c0_i32_1 = arith.constant 0 : i32
    return %c0_i32, %c0_i32_0 : i32, i32
  }
  func.func @transform_3(%arg0: i32) -> (i32, i32) {
    %c0_i32 = arith.constant 0 : i32
    %c0_i32_0 = arith.constant 0 : i32
    %c0_i32_1 = arith.constant 0 : i32
    return %c0_i32, %c0_i32_0 : i32, i32
  }
}

</mosaic_0001>

<bundles_post_ra>
// kernel: tpu_custom_call.1
= control target key start
LH: loop header
LB: loop body
LE: loop exit
PB: predicated region body
PF: predicated region fallthrough
CT: control target
= control target key end

     0   :  { %8 = vsyncpa [#allocation3], 0  ;;  %s398_s0 = inlined_call_operand.hbm [shape: f32[2,128], index: 0, kind: input, shape index: {}]   ;;  %s399_s1 = inlined_call_operand.hbm [shape: bf16[128,256], index: 1, kind: input, shape index: {}]   ;;  %s400_s2 = inlined_call_operand.vmem [shape: f32[1,256], index: 2, kind: input, shape index: {}]   ;;  %s401_s3 = inlined_call_operand.hbm [shape: bf16[2,256], index: 3, kind: output, shape index: {}]  }
   0x1   :  { %9 = vsyncpa [#allocation6], 0 }
   0x2   :  { %10 = vsyncpa [#allocation4], 0  ;;  %s359_s12 = smov [#allocation2]   ;;  %s360_s14 = smov [#allocation5]  }
   0x3   :  { %s17_s13 = sshll.u32 %s359_s12, 4  ;;  %s26_s15 = sshll.u32 %s360_s14, 4  ;;  %s18_s13 = int_to_ptr.vmem [resolvable:$true] %s17_s13  ;;  %s27_s15 = int_to_ptr.vmem [resolvable:$true] %s26_s15 }
   0x4   :  { %s301_s16 = scalar_lea.vmem %s18_s13, 32  ;;  %p306_p1 = scmp.lt.s32.totalorder %s18_s13, %s18_s13 }
   0x5   :  { %p302_p0 = scmp.ne.s32.totalorder %s18_s13, %s301_s16  ;;  %p307_p2 = scmp.lt.s32.totalorder %s301_s16, %s301_s16 }
   0x7   :  { %p308_p3 = por %p307_p2, %p306_p1 }
   0x9   :  { %p309_p4 = pnand %p308_p3, %p302_p0 }
   0xb   :  { %312 = shalt.err (!%p309_p4)
}
   0xc   :  { %20 = dma.hbm_to_vmem [thread:$0]  %s398_s0, 32, %s18_s13, [#allocation3]  }
   0xd   :  { %s321_s19 = scalar_lea.vmem %s27_s15, 2048  ;;  %p326_p6 = scmp.lt.s32.totalorder %s27_s15, %s27_s15 }
   0xe   :  { %p322_p5 = scmp.ne.s32.totalorder %s27_s15, %s321_s19  ;;  %p327_p7 = scmp.lt.s32.totalorder %s321_s19, %s321_s19 }
  0x10   :  { %p328_p8 = por %p327_p7, %p326_p6 }
  0x12   :  { %p329_p9 = pnand %p328_p8, %p322_p5 }
  0x14   :  { %332 = shalt.err (!%p329_p9)
}
  0x15   :  { %s361_s20 = smov 128   ;;  %s362_s21 = smov 8  }
  0x16   :  { %32 = dma.hbm_to_vmem [thread:$0]  %s399_s1, 2048, %s27_s15, [#allocation6], %s361_s20, %s361_s20, %s362_s21  }
  0x17   :  { %353 = dma.done.wait [#allocation3], 32  }
  0x18   :  { %354 = vsyncadd [#allocation3], 4294967264 }
  0x19   :  { %355 = dma.done.wait [#allocation6], 2048  }
  0x1a   :  { %356 = vsyncadd [#allocation6], 4294965248  ;;  %v363_v0 = vmov 0   ;;  %v265_v1 = vld [vmem:[#allocation5 + $0x74] ss:$8 sps:$4 sm:$0xff]   ;;  %v62_v19 = vlaneseq }
  0x1b   :  { %184 = vmatprep.mubr.bf16.mxu0 %v363_v0  ;;  %v267_v2 = vld [vmem:[#allocation5 + $0x70] ss:$8 sps:$4 sm:$0xff]   ;;  %152 = vmatprep.subr.bf16.mxu0 %v265_v1  ;;  %v268_v3 = vld [vmem:[#allocation5 + $0x64] ss:$8 sps:$4 sm:$0xff]   ;;  %v270_v4 = vld [vmem:[#allocation5 + $0x60] ss:$8 sps:$4 sm:$0xff]  }
  0x1c   :  { %153 = vmatpush1.bf16.msra.mxu0 %v267_v2  ;;  %v271_v5 = vld [vmem:[#allocation5 + $0x54] ss:$8 sps:$4 sm:$0xff]   ;;  %v273_v6 = vld [vmem:[#allocation5 + $0x50] ss:$8 sps:$4 sm:$0xff]   ;;  %v274_v7 = vld [vmem:[#allocation5 + $0x44] ss:$8 sps:$4 sm:$0xff]  }
  0x1d   :  { %154 = vmatprep.subr.bf16.mxu0 %v268_v3  ;;  %v276_v8 = vld [vmem:[#allocation5 + $0x40] ss:$8 sps:$4 sm:$0xff]   ;;  %v277_v9 = vld [vmem:[#allocation5 + $0x34] ss:$8 sps:$4 sm:$0xff]   ;;  %v279_v10 = vld [vmem:[#allocation5 + $0x30] ss:$8 sps:$4 sm:$0xff]  }
  0x1e   :  { %v280_v11 = vld [vmem:[#allocation5 + $0x24] ss:$8 sps:$4 sm:$0xff]   ;;  %v282_v12 = vld [vmem:[#allocation5 + $0x20] ss:$8 sps:$4 sm:$0xff]   ;;  %v283_v13 = vld [vmem:[#allocation5 + $0x14] ss:$8 sps:$4 sm:$0xff]  }
  0x1f   :  { %v285_v14 = vld [vmem:[#allocation5 + $0x10] ss:$8 sps:$4 sm:$0xff]   ;;  %v286_v15 = vld [vmem:[#allocation5 + $0x4] ss:$8 sps:$4 sm:$0xff]   ;;  %v288_v16 = vld [vmem:[#allocation5] ss:$8 sps:$4 sm:$0xff]  }
  0x20   :  { %155 = vmatpush1.bf16.msra.mxu0 %v270_v4  ;;  %v42_v17 = vld [vmem:[#allocation2] sm:$0x3]  ;;  %v63_v20 = vshrl.u32 %v62_v19, 7  ;;  %v364_v34 = vmov 1966171168  }
  0x21   :  { %156 = vmatprep.subr.bf16.mxu0 %v271_v5  ;;  %v43_v18 = vpack.c.bf16 %v42_v17, %v42_v17  ;;  %v60_v22 = vld [vmem:[%s400_s2] sm:$0x3]  ;;  %v209_v35 = vunpack.c.l.s4 %v364_v34  ;;  %s365_s2 = smov [#allocation7]  }
  0x22   :  { %v64_v21 = vsub.s32 0, %v63_v20  ;;  %v68_v23 = vsub.s32 1, %v63_v20  ;;  %s230_s24 = sshll.u32 %s365_s2, 4  ;;  %s231_s24 = int_to_ptr.vmem [resolvable:$true] %s230_s24 }
  0x23   :  { %v210_v38 = vunpack.c.0.s8 %v209_v35  ;;  %s333_s25 = scalar_lea.vmem %s231_s24, 32  ;;  %p338_p11 = scmp.lt.s32.totalorder %s231_s24, %s231_s24 }
  0x24   :  { %157 = vmatpush1.bf16.msra.mxu0 %v273_v6  ;;  %v65_v24 = vrot.slane %v60_v22, %v64_v21  ;;  %v69_v25 = vrot.slane %v60_v22, %v68_v23  ;;  %p334_p10 = scmp.ne.s32.totalorder %s231_s24, %s333_s25  ;;  %p339_p12 = scmp.lt.s32.totalorder %s333_s25, %s333_s25 }
  0x25   :  { %158 = vmatprep.subr.bf16.mxu0 %v274_v7  ;;  %v213_v45 = vsub.s32 %v210_v38, %v63_v20 }
  0x26   :  { %p340_p13 = por %p339_p12, %p338_p11 }
  0x28   :  { %159 = vmatpush1.bf16.msra.mxu0 %v276_v8  ;;  %p341_p0 = pnand %p340_p13, %p334_p10 }
  0x29   :  { %160 = vmatprep.subr.bf16.mxu0 %v277_v9 }
  0x2c   :  { %161 = vmatpush1.bf16.msra.mxu0 %v279_v10 }
  0x2d   :  { %162 = vmatprep.subr.bf16.mxu0 %v280_v11 }
  0x30   :  { %163 = vmatpush1.bf16.msra.mxu0 %v282_v12 }
  0x31   :  { %164 = vmatprep.subr.bf16.mxu0 %v283_v13 }
  0x34   :  { %165 = vmatpush1.bf16.msra.mxu0 %v285_v14 }
  0x35   :  { %166 = vmatprep.subr.bf16.mxu0 %v286_v15 }
  0x38   :  { %167 = vmatpush1.bf16.msra.mxu0 %v288_v16 }
  0x3b   :  { %185 = vmatmul.mubr.bf16.vlgmr.msra.gmra.mxu0 %v43_v18 }
  0xfb   :  { %v186_v26 = vpop.f32.mrf.mxu0 }
  0xfc   :  { %v187_v27 = vadd.f32 %v186_v26, %v65_v24 }
  0xfd   :  { %v188_v28 = vpop.f32.mrf.mxu0 }
  0xfe   :  { %v195_v29 = vmul.f32 0.70710677, %v187_v27  ;;  %v189_v30 = vadd.f32 %v188_v28, %v69_v25  ;;  %v193_v40 = vmul.f32 0.5, %v187_v27 }
  0xff   :  { %v190_v31 = vpop.f32.mrf.mxu0 }
 0x100   :  { %289 = verf.f32 %v195_v29  ;;  %v196_v32 = vmul.f32 0.70710677, %v189_v30  ;;  %v194_v41 = vmul.f32 0.5, %v189_v30 }
 0x101   :  { %v191_v33 = vpop.f32.mrf.mxu0 }
 0x102   :  { %291 = verf.f32 %v196_v32 }
 0x10d   :  { %v290_v36 = vpop.eup %289 }
 0x10e   :  { %v199_v37 = vadd.f32 1.0, %v290_v36 }
 0x10f   :  { %v292_v39 = vpop.eup %291 }
 0x110   :  { %v200_v42 = vadd.f32 1.0, %v292_v39  ;;  %v201_v43 = vmul.f32 %v199_v37, %v193_v40 }
 0x112   :  { %v202_v44 = vmul.f32 %v200_v42, %v194_v41 }
 0x114   :  { %v256_v46 = vpack.c.bf16 %v202_v44, %v201_v43 }
 0x116   :  { %v214_v47 = vrot.slane %v256_v46, %v213_v45 }
 0x118   :  { %257 = vst.sshfl [vmem:[#allocation7] sm:$0x5 pattern:$0x73625140] %v214_v47 }
 0x119   :  { %344 = shalt.err (!%p341_p0)
}
 0x11a   :  { %233 = dma.vmem_to_hbm [thread:$0]  %s231_s24, 32, %s401_s3, [#allocation4]  }
 0x11b   :  { %357 = dma.done.wait [#allocation4], 32  }
 0x11c   :  { %358 = vsyncadd [#allocation4], 4294967264 }
 0x11d   :  { %237 = vsyncpa [#allocation3], 1 }
 0x11e   :  { %238 = vsyncpa [#allocation6], 1 }
 0x11f   :  { %239 = vsyncpa [#allocation4], 1 }

</bundles_post_ra>
